<compile_context>
chip_gen: v5e
topology: v5e:2x2
jax: 0.10.0
libtpu: 0.0.40
codegen_flags: <defaults>
</compile_context>

<pallas_src>
import jax
import jax.numpy as jnp
from jax.experimental import pallas as pl
from jax.experimental.pallas import tpu as pltpu


def _log_kernel(x_ref, o_ref):
    # Elementwise natural log on the whole VMEM tile (EUP work; DMA-bound op).
    o_ref[...] = jnp.log(x_ref[...]).astype(o_ref.dtype)


def pallas_log(x: jax.Array, *, target_tile_bytes: int = 4 * 1024 * 1024) -> jax.Array:
    """Elementwise natural log via a Pallas TPU kernel. Matches torch.log(X)."""
    orig_shape = x.shape
    in_dtype = x.dtype
    # torch.log promotes integer/bool tensors to float.
    out_dtype = in_dtype if jnp.issubdtype(in_dtype, jnp.inexact) else jnp.float32

    n = int(x.size)
    if n == 0:
        return jnp.zeros(orig_shape, dtype=out_dtype)

    lanes = 128
    in_item = jnp.dtype(in_dtype).itemsize
    out_item = jnp.dtype(out_dtype).itemsize
    max_item = max(in_item, out_item)

    # NOTE: x.reshape(-1) is free only for contiguous inputs; a strided input
    # would materialize one copy outside the kernel (still correct).
    flat = x.reshape(-1)

    # Split into a 128-aligned prefix (kernel) and a tiny tail (<128 elems, XLA).
    n_main = (n // lanes) * lanes
    n_tail = n - n_main

    if n_main == 0:
        # Tiny input (< 128 elements): not worth a kernel launch.
        return jnp.log(flat).astype(out_dtype).reshape(orig_shape)

    rows = n_main // lanes
    x2d = flat[:n_main].reshape(rows, lanes)

    # Full-vreg sublane packing quantum: 8 rows for 32-bit, 16 for bf16, 32 for int8.
    min_sub = max(
        max(8, 32 // max(in_item, 1)),
        max(8, 32 // max(out_item, 1)),
    )

    # Byte-budget tile: ~target_tile_bytes per (wider-dtype) tile, rounded down
    # to the sublane packing quantum.
    br_target = max(min_sub, (target_tile_bytes // (lanes * max_item)) // min_sub * min_sub)

    total_in_bytes = rows * lanes * in_item
    if total_in_bytes <= 256 * 1024:
        # Genuinely tiny: one block covering the whole array ("full dim" escape).
        br = rows
    else:
        # Force at least ~4 grid steps so the pipeline double-buffers and the
        # parallel axis can split across both TensorCores on v7x.
        br_cap = max(min_sub, (pl.cdiv(rows, 4) // min_sub) * min_sub)
        br = min(br_target, br_cap)

    grid = (pl.cdiv(rows, br),)

    out2d = pl.pallas_call(
        _log_kernel,
        out_shape=jax.ShapeDtypeStruct((rows, lanes), out_dtype),
        grid_spec=pl.GridSpec(
            grid=grid,
            in_specs=[pl.BlockSpec((br, lanes), lambda i: (i, 0))],
            out_specs=pl.BlockSpec((br, lanes), lambda i: (i, 0)),
        ),
        compiler_params=pltpu.CompilerParams(
            dimension_semantics=("parallel",),
            # Raised above v5e's 16 MiB scoped default so the 16 MiB
            # double-buffered working set compiles; well inside v7x's 64 MiB
            # physical VMEM.
            vmem_limit_bytes=32 * 1024 * 1024,
        ),
        cost_estimate=pl.CostEstimate(
            flops=0,
            transcendentals=n_main,
            bytes_accessed=n_main * (in_item + out_item),
        ),
    )(x2d)

    out_main = out2d.reshape(-1)
    if n_tail:
        # Stitch only the tiny tail; no whole-array padding pass.
        out_tail = jnp.log(flat[n_main:]).astype(out_dtype)
        out_flat = jnp.concatenate([out_main, out_tail])
    else:
        out_flat = out_main
    return out_flat.reshape(orig_shape)


if __name__ == "__main__":
    # The _Log module has no parameters; just build deterministic inputs.
    key = jax.random.PRNGKey(0)

    # 1) NCHW-style input, strictly positive so log is well-defined.
    x = jax.random.uniform(
        key, (2, 4, 16, 16), dtype=jnp.float32, minval=0.1, maxval=2.0
    )
    y = pallas_log(x)
    jax.block_until_ready(y)
    assert y.shape == x.shape and y.dtype == x.dtype
    assert jnp.allclose(y, jnp.log(x), rtol=1e-6, atol=1e-6), "mismatch vs jnp.log"

    # 2) Larger input to exercise the multi-block grid path (512 KiB f32).
    x_big = jax.random.uniform(
        jax.random.PRNGKey(2), (64, 2048), dtype=jnp.float32, minval=0.1, maxval=2.0
    )
    y_big = pallas_log(x_big)
    jax.block_until_ready(y_big)
    assert jnp.allclose(y_big, jnp.log(x_big), rtol=1e-6, atol=1e-6), "mismatch (big)"

    # 3) Ragged size with an aligned prefix + tail (917 = 7*131 elements).
    x_rag = jax.random.uniform(
        jax.random.PRNGKey(3), (7, 131), dtype=jnp.float32, minval=0.1, maxval=2.0
    )
    y_rag = pallas_log(x_rag)
    jax.block_until_ready(y_rag)
    assert jnp.allclose(y_rag, jnp.log(x_rag), rtol=1e-6, atol=1e-6), "mismatch (ragged)"

    # 4) Tiny ragged size (< 128 elements) — pure-XLA fallback path.
    x_tiny = jax.random.uniform(
        jax.random.PRNGKey(1), (3, 5, 7), dtype=jnp.float32, minval=0.1, maxval=2.0
    )
    y_tiny = pallas_log(x_tiny)
    jax.block_until_ready(y_tiny)
    assert jnp.allclose(y_tiny, jnp.log(x_tiny), rtol=1e-6, atol=1e-6), "mismatch (tiny)"

    # 5) bf16 input: byte-budget tiling keeps tiles large for sub-32-bit dtypes.
    x_bf = jax.random.uniform(
        jax.random.PRNGKey(4), (8, 512), dtype=jnp.float32, minval=0.1, maxval=2.0
    ).astype(jnp.bfloat16)
    y_bf = pallas_log(x_bf)
    jax.block_until_ready(y_bf)
    assert y_bf.dtype == jnp.bfloat16
    assert jnp.allclose(
        y_bf.astype(jnp.float32), jnp.log(x_bf.astype(jnp.float32)), rtol=2e-2, atol=2e-2
    ), "mismatch (bf16)"

    print("KERNEL_OK")
</pallas_src>

<mosaic_0001>
module attributes {stable_mosaic.version = 11 : i64} {
  func.func @_log_kernel(%arg0: i32, %arg1: memref<16x128xf32, #tpu.memory_space<vmem>>, %arg2: memref<16x128xf32, #tpu.memory_space<vmem>>) attributes {dimension_semantics = [#tpu.dimension_semantics<parallel>], iteration_bounds = array<i64: 1>, scalar_prefetch = 0 : i64, scratch_operands = 0 : i64, tpu.core_type = #tpu.core_type<tc>, window_params = [{transform_indices = @transform_0, window_bounds = array<i64: 16, 128>}, {transform_indices = @transform_1, window_bounds = array<i64: 16, 128>}]} {
    %c0 = arith.constant 0 : index
    %c0_0 = arith.constant 0 : index
    %0 = vector.load %arg1[%c0, %c0_0] : memref<16x128xf32, #tpu.memory_space<vmem>>, vector<16x128xf32>
    %1 = math.log %0 : vector<16x128xf32>
    %c0_1 = arith.constant 0 : index
    %c0_2 = arith.constant 0 : index
    %2 = vector.load %arg2[%c0_1, %c0_2] : memref<16x128xf32, #tpu.memory_space<vmem>>, vector<16x128xf32>
    tpu.vector_store %arg2[%c0_1, %c0_2], %1 {strides = array<i32>} : memref<16x128xf32, #tpu.memory_space<vmem>>, vector<16x128xf32>,
    return
  }
  func.func @transform_0(%arg0: i32) -> (i32, i32) {
    %c0_i32 = arith.constant 0 : i32
    %c0_i32_0 = arith.constant 0 : i32
    return %arg0, %c0_i32 : i32, i32
  }
  func.func @transform_1(%arg0: i32) -> (i32, i32) {
    %c0_i32 = arith.constant 0 : i32
    %c0_i32_0 = arith.constant 0 : i32
    return %arg0, %c0_i32 : i32, i32
  }
}

</mosaic_0001>

<bundles_post_ra>
// kernel: tpu_custom_call.1
= control target key start
LH: loop header
LB: loop body
LE: loop exit
PB: predicated region body
PF: predicated region fallthrough
CT: control target
= control target key end

     0   :  { %6 = vsyncpa [#allocation3], 0  ;;  %s132_s0 = inlined_call_operand.hbm [shape: f32[16,128], index: 0, kind: input, shape index: {}]   ;;  %s133_s1 = inlined_call_operand.hbm [shape: f32[16,128], index: 1, kind: output, shape index: {}]  }
   0x1   :  { %7 = vsyncpa [#allocation4], 0  ;;  %s12_s8 = sshll.u32 %s132_s0, 4  ;;  %s112_s9 = smov [#allocation2]   ;;  %s13_s8 = int_to_ptr.hbm [resolvable:$true] %s12_s8 }
   0x2   :  { %s14_s10 = sshll.u32 %s112_s9, 4  ;;  %s113_s11 = smov 128   ;;  %s15_s10 = int_to_ptr.vmem [resolvable:$true] %s14_s10 }
   0x3   :  { %s114_s12 = smov 8  }
   0x4   :  { %20 = dma.hbm_to_vmem [thread:$0]  %s13_s8, 256, %s15_s10, [#allocation3], %s113_s11, %s113_s11, %s114_s12  }
   0x5   :  { %108 = dma.done.wait [#allocation3], 256  }
   0x6   :  { %109 = vsyncadd [#allocation3], 4294967040  ;;  %v25_v0 = vld [vmem:[#allocation2] sm:$0xff]  ;;  %v26_v1 = vld [vmem:[#allocation2 + $0x8] sm:$0xff]  ;;  %s115_s13 = smov [#allocation5]   ;;  %s39_s17 = sshll.u32 %s133_s1, 4  ;;  %s40_s17 = int_to_ptr.hbm [resolvable:$true] %s39_s17 }
   0x7   :  { %56 = vlog2.f32 %v25_v0  ;;  %s37_s14 = sshll.u32 %s115_s13, 4  ;;  %s38_s14 = int_to_ptr.vmem [resolvable:$true] %s37_s14 }
   0x8   :  { %58 = vlog2.f32 %v26_v1 }
   0xd   :  { %v57_v2 = vpop.eup %56 }
   0xe   :  { %v59_v3 = vpop.eup %58  ;;  %v28_v4 = vmul.f32 0.6931472, %v57_v2 }
   0xf   :  { %v30_v5 = vmul.f32 0.6931472, %v59_v3 }
  0x10   :  { %31 = vst [vmem:[#allocation5] sm:$0xff] %v28_v4 }
  0x11   :  { %32 = vst [vmem:[#allocation5 + $0x8] sm:$0xff] %v30_v5 }
  0x12   :  { %45 = dma.vmem_to_hbm [thread:$0]  %s38_s14, 256, %s40_s17, [#allocation4], %s113_s11, %s113_s11, %s114_s12  }
  0x13   :  { %110 = dma.done.wait [#allocation4], 256  }
  0x14   :  { %111 = vsyncadd [#allocation4], 4294967040 }
  0x15   :  { %50 = vsyncpa [#allocation3], 1 }
  0x16   :  { %51 = vsyncpa [#allocation4], 1 }

</bundles_post_ra>
